<compile_context>
chip_gen: v7x
topology: tpu7x:2x2x1
jax: 0.10.0
libtpu: 0.0.40
codegen_flags: <defaults>
</compile_context>

<pallas_src>
import jax
import jax.numpy as jnp
from jax.experimental import pallas as pl
from jax.experimental.pallas import tpu as pltpu


# ----------------------------- Pallas kernel ------------------------------- #

def _classifier_kernel(idx_d_ref, idx_l_ref, t_ref, b1_ref, w2_ref, b2_ref, o_ref):
    """Fused gather+concat+fc1+ReLU+fc2 for one tile of edges.

    idx_d/idx_l: [E, 1] int32 (idx_l already offset by Nd)
    t:  [Nd+Nl, H] bf16   (pre-applied fc1 weights per node row)
    b1: [1, H] f32        w2: [H, O] bf16        b2: [1, O] f32
    out: [E, O] f32
    """
    e = idx_d_ref.shape[0]
    n_total = t_ref.shape[0]

    # Combined one-hot with two 1s per row -> single K=(Nd+Nl) MXU matmul.
    iota = jax.lax.broadcasted_iota(jnp.int32, (e, n_total), 1)
    onehot = jnp.logical_or(iota == idx_d_ref[...],
                            iota == idx_l_ref[...]).astype(jnp.bfloat16)

    # fc1 (weights already folded into T) + bias + ReLU, f32 accumulation.
    h = jnp.dot(onehot, t_ref[...], preferred_element_type=jnp.float32) + b1_ref[...]
    h = jnp.maximum(h, 0.0)

    # fc2
    o_ref[...] = (jnp.dot(h.astype(jnp.bfloat16), w2_ref[...],
                          preferred_element_type=jnp.float32) + b2_ref[...])


# ------------------------------ host wrapper ------------------------------- #

def _pick_edge_tile(e, requested):
    """Tile = multiple of 8; ensure >=2 grid steps when there is enough work."""
    tile = max(8, min(requested, e))
    if e >= 16 and pl.cdiv(e, tile) < 2:     # give v7x's second TC something to do
        tile = pl.cdiv(e, 2)
    return ((tile + 7) // 8) * 8


def classifier_forward(x_disease, x_lncrna, edge_label_index, params, *,
                       edge_tile=512):
    """Pallas implementation of Classifier.forward."""
    nd, d = x_disease.shape
    nl = x_lncrna.shape[0]
    e = edge_label_index.shape[1]
    out_ch = params["w2"].shape[1]

    # Fold fc1's weights into a per-node table so gather+concat+fc1 is 1 matmul.
    t = jnp.concatenate(
        [x_disease.astype(jnp.float32) @ params["w1"][:d],
         x_lncrna.astype(jnp.float32) @ params["w1"][d:]], axis=0
    ).astype(jnp.bfloat16)                                           # [Nd+Nl, H]

    # Clip (PyTorch would raise on OOB; avoid silent all-zero gathers here).
    idx_d = jnp.clip(edge_label_index[0].astype(jnp.int32), 0, nd - 1)
    idx_l = jnp.clip(edge_label_index[1].astype(jnp.int32), 0, nl - 1) + nd

    tile = _pick_edge_tile(e, edge_tile)
    e_pad = pl.cdiv(e, tile) * tile
    if e_pad != e:
        pad = e_pad - e
        idx_d = jnp.concatenate([idx_d, jnp.zeros((pad,), jnp.int32)])
        idx_l = jnp.concatenate([idx_l, jnp.full((pad,), nd, jnp.int32)])
    idx_d = idx_d.reshape(e_pad, 1)
    idx_l = idx_l.reshape(e_pad, 1)

    grid = (e_pad // tile,)
    tiled = lambda i: (i, 0)      # tile over edges
    full = lambda i: (0, 0)       # params / node table: VMEM-resident, same block

    b1 = params["b1"].astype(jnp.float32)
    w2 = params["w2"].astype(jnp.bfloat16)
    b2 = params["b2"].astype(jnp.float32)

    out = pl.pallas_call(
        _classifier_kernel,
        out_shape=jax.ShapeDtypeStruct((e_pad, out_ch), jnp.float32),
        grid=grid,
        in_specs=[
            pl.BlockSpec((tile, 1), tiled),     # idx_d
            pl.BlockSpec((tile, 1), tiled),     # idx_l (already offset by Nd)
            pl.BlockSpec(t.shape, full),        # T = fc1-folded node table
            pl.BlockSpec(b1.shape, full),       # b1
            pl.BlockSpec(w2.shape, full),       # W2
            pl.BlockSpec(b2.shape, full),       # b2
        ],
        out_specs=pl.BlockSpec((tile, out_ch), tiled),
        compiler_params=pltpu.CompilerParams(
            dimension_semantics=("parallel",),
            vmem_limit_bytes=64 * 1024 * 1024),
    )(idx_d, idx_l, t, b1, w2, b2)

    return out[:e]   # drop padded edge rows


# ----------------------------------- main ----------------------------------- #

if __name__ == "__main__":
    N_DISEASE = 64          # number of disease nodes
    N_LNCRNA = 64           # number of lncRNA nodes
    FEAT = 64               # per-entity embedding dim (concat -> mlp_hidden)
    MLP_HIDDEN = 2 * FEAT   # 128, lane-dense fc1 width
    MLP_OUT = 128           # mlp_out_channels, lane-dense output
    N_EDGES = 300           # not a tile multiple on purpose (exercises padding)

    root = jax.random.PRNGKey(0)
    k = jax.random.split(root, 8)

    x_disease = jax.random.normal(k[0], (N_DISEASE, FEAT), jnp.float32)
    x_lncrna = jax.random.normal(k[1], (N_LNCRNA, FEAT), jnp.float32)
    edge_label_index = jnp.stack([
        jax.random.randint(k[2], (N_EDGES,), 0, N_DISEASE),
        jax.random.randint(k[3], (N_EDGES,), 0, N_LNCRNA),
    ], axis=0)

    params = {
        "w1": 0.1 * jax.random.normal(k[4], (MLP_HIDDEN, MLP_HIDDEN), jnp.float32),
        "b1": 0.1 * jax.random.normal(k[5], (1, MLP_HIDDEN), jnp.float32),
        "w2": 0.1 * jax.random.normal(k[6], (MLP_HIDDEN, MLP_OUT), jnp.float32),
        "b2": 0.1 * jax.random.normal(k[7], (1, MLP_OUT), jnp.float32),
    }

    fwd = jax.jit(classifier_forward)
    out = fwd(x_disease, x_lncrna, edge_label_index, params)
    jax.block_until_ready(out)

    # pure-JAX f32 reference (same math as the PyTorch module)
    ef_d = x_disease[edge_label_index[0]]
    ef_l = x_lncrna[edge_label_index[1]]
    cat = jnp.concatenate([ef_d, ef_l], axis=-1)
    h_ref = jnp.maximum(cat @ params["w1"] + params["b1"], 0.0)
    ref = h_ref @ params["w2"] + params["b2"]

    assert out.shape == (N_EDGES, MLP_OUT)
    assert bool(jnp.all(jnp.isfinite(out)))
    assert bool(jnp.allclose(out, ref, rtol=2e-2, atol=2e-2)), \
        float(jnp.max(jnp.abs(out - ref)))

    print("KERNEL_OK")
</pallas_src>

<mosaic_0001>
module attributes {stable_mosaic.version = 11 : i64} {
  func.func @_classifier_kernel(%arg0: i32, %arg1: memref<152x1xi32, #tpu.memory_space<vmem>>, %arg2: memref<152x1xi32, #tpu.memory_space<vmem>>, %arg3: memref<128x128xbf16, #tpu.memory_space<vmem>>, %arg4: memref<1x128xf32, #tpu.memory_space<vmem>>, %arg5: memref<128x128xbf16, #tpu.memory_space<vmem>>, %arg6: memref<1x128xf32, #tpu.memory_space<vmem>>, %arg7: memref<152x128xf32, #tpu.memory_space<vmem>>) attributes {dimension_semantics = [#tpu.dimension_semantics<parallel>], iteration_bounds = array<i64: 2>, scalar_prefetch = 0 : i64, scratch_operands = 0 : i64, tpu.core_type = #tpu.core_type<tc>, window_params = [{transform_indices = @transform_0, window_bounds = array<i64: 152, 1>}, {transform_indices = @transform_1, window_bounds = array<i64: 152, 1>}, {pipeline_mode = #tpu.pipeline_mode<synchronous>, transform_indices = @transform_2, window_bounds = array<i64: 128, 128>}, {pipeline_mode = #tpu.pipeline_mode<synchronous>, transform_indices = @transform_3, window_bounds = array<i64: 1, 128>}, {pipeline_mode = #tpu.pipeline_mode<synchronous>, transform_indices = @transform_4, window_bounds = array<i64: 128, 128>}, {pipeline_mode = #tpu.pipeline_mode<synchronous>, transform_indices = @transform_5, window_bounds = array<i64: 1, 128>}, {transform_indices = @transform_6, window_bounds = array<i64: 152, 128>}]} {
    %0 = tpu.iota {dimensions = array<i32: 1>} : vector<152x128xi32>
    %c0 = arith.constant 0 : index
    %c0_0 = arith.constant 0 : index
    %1 = vector.load %arg1[%c0, %c0_0] : memref<152x1xi32, #tpu.memory_space<vmem>>, vector<152x1xi32>
    %2 = vector.broadcast %1 : vector<152x1xi32> to vector<152x128xi32>
    %3 = arith.cmpi eq, %0, %2 : vector<152x128xi32>
    %c0_1 = arith.constant 0 : index
    %c0_2 = arith.constant 0 : index
    %4 = vector.load %arg2[%c0_1, %c0_2] : memref<152x1xi32, #tpu.memory_space<vmem>>, vector<152x1xi32>
    %5 = vector.broadcast %4 : vector<152x1xi32> to vector<152x128xi32>
    %6 = arith.cmpi eq, %0, %5 : vector<152x128xi32>
    %7 = arith.ori %3, %6 : vector<152x128xi1>
    %8 = arith.extui %7 : vector<152x128xi1> to vector<152x128xi32>
    %9 = arith.sitofp %8 : vector<152x128xi32> to vector<152x128xf32>
    %10 = arith.truncf %9 : vector<152x128xf32> to vector<152x128xbf16>
    %c0_3 = arith.constant 0 : index
    %c0_4 = arith.constant 0 : index
    %11 = vector.load %arg3[%c0_3, %c0_4] : memref<128x128xbf16, #tpu.memory_space<vmem>>, vector<128x128xbf16>
    %cst = arith.constant dense<0.000000e+00> : vector<152x128xf32>
    %12 = tpu.matmul %10, %11, %cst {dimension_numbers = #tpu.dot_dimension_numbers<[1], [0], [0], [1], [0, 0, 1, 1], [], []>} : vector<152x128xbf16>, vector<128x128xbf16>, vector<152x128xf32> -> vector<152x128xf32>
    %c0_5 = arith.constant 0 : index
    %c0_6 = arith.constant 0 : index
    %13 = vector.load %arg4[%c0_5, %c0_6] : memref<1x128xf32, #tpu.memory_space<vmem>>, vector<1x128xf32>
    %14 = vector.broadcast %13 : vector<1x128xf32> to vector<152x128xf32>
    %15 = arith.addf %12, %14 : vector<152x128xf32>
    %cst_7 = arith.constant 0.000000e+00 : f32
    %16 = vector.broadcast %cst_7 : f32 to vector<152x128xf32>
    %17 = arith.maximumf %15, %16 : vector<152x128xf32>
    %18 = arith.truncf %17 : vector<152x128xf32> to vector<152x128xbf16>
    %c0_8 = arith.constant 0 : index
    %c0_9 = arith.constant 0 : index
    %19 = vector.load %arg5[%c0_8, %c0_9] : memref<128x128xbf16, #tpu.memory_space<vmem>>, vector<128x128xbf16>
    %cst_10 = arith.constant dense<0.000000e+00> : vector<152x128xf32>
    %20 = tpu.matmul %18, %19, %cst_10 {dimension_numbers = #tpu.dot_dimension_numbers<[1], [0], [0], [1], [0, 0, 1, 1], [], []>} : vector<152x128xbf16>, vector<128x128xbf16>, vector<152x128xf32> -> vector<152x128xf32>
    %c0_11 = arith.constant 0 : index
    %c0_12 = arith.constant 0 : index
    %21 = vector.load %arg6[%c0_11, %c0_12] : memref<1x128xf32, #tpu.memory_space<vmem>>, vector<1x128xf32>
    %22 = vector.broadcast %21 : vector<1x128xf32> to vector<152x128xf32>
    %23 = arith.addf %20, %22 : vector<152x128xf32>
    %c0_13 = arith.constant 0 : index
    %c0_14 = arith.constant 0 : index
    %24 = vector.load %arg7[%c0_13, %c0_14] : memref<152x128xf32, #tpu.memory_space<vmem>>, vector<152x128xf32>
    tpu.vector_store %arg7[%c0_13, %c0_14], %23 {strides = array<i32>} : memref<152x128xf32, #tpu.memory_space<vmem>>, vector<152x128xf32>,
    return
  }
  func.func @transform_0(%arg0: i32) -> (i32, i32) {
    %c0_i32 = arith.constant 0 : i32
    %c0_i32_0 = arith.constant 0 : i32
    return %arg0, %c0_i32 : i32, i32
  }
  func.func @transform_1(%arg0: i32) -> (i32, i32) {
    %c0_i32 = arith.constant 0 : i32
    %c0_i32_0 = arith.constant 0 : i32
    return %arg0, %c0_i32 : i32, i32
  }
  func.func @transform_2(%arg0: i32) -> (i32, i32) {
    %c0_i32 = arith.constant 0 : i32
    %c0_i32_0 = arith.constant 0 : i32
    %c0_i32_1 = arith.constant 0 : i32
    return %c0_i32, %c0_i32_0 : i32, i32
  }
  func.func @transform_3(%arg0: i32) -> (i32, i32) {
    %c0_i32 = arith.constant 0 : i32
    %c0_i32_0 = arith.constant 0 : i32
    %c0_i32_1 = arith.constant 0 : i32
    return %c0_i32, %c0_i32_0 : i32, i32
  }
  func.func @transform_4(%arg0: i32) -> (i32, i32) {
    %c0_i32 = arith.constant 0 : i32
    %c0_i32_0 = arith.constant 0 : i32
    %c0_i32_1 = arith.constant 0 : i32
    return %c0_i32, %c0_i32_0 : i32, i32
  }
  func.func @transform_5(%arg0: i32) -> (i32, i32) {
    %c0_i32 = arith.constant 0 : i32
    %c0_i32_0 = arith.constant 0 : i32
    %c0_i32_1 = arith.constant 0 : i32
    return %c0_i32, %c0_i32_0 : i32, i32
  }
  func.func @transform_6(%arg0: i32) -> (i32, i32) {
    %c0_i32 = arith.constant 0 : i32
    %c0_i32_0 = arith.constant 0 : i32
    return %arg0, %c0_i32 : i32, i32
  }
}

</mosaic_0001>

<bundles_post_ra>
// kernel: classifier_forward.1
= control target key start
LH: loop header
LB: loop body
LE: loop exit
PB: predicated region body
PF: predicated region fallthrough
CT: control target
= control target key end

     0   :  { %s2284_s0 = inlined_call_operand.hbm [shape: s32[304,1], index: 0, kind: input, shape index: {}]   ;;  %s2285_s1 = inlined_call_operand.hbm [shape: s32[304,1], index: 1, kind: input, shape index: {}]   ;;  %s2286_s2 = inlined_call_operand.hbm [shape: bf16[128,128], index: 2, kind: input, shape index: {}]   ;;  %s2287_s3 = inlined_call_operand.hbm [shape: f32[1,128], index: 3, kind: input, shape index: {}]   ;;  %s2288_s4 = inlined_call_operand.hbm [shape: bf16[128,128], index: 4, kind: input, shape index: {}]   ;;  %s2289_s5 = inlined_call_operand.hbm [shape: f32[1,128], index: 5, kind: input, shape index: {}]   ;;  %s2290_s6 = inlined_call_operand.hbm [shape: f32[304,128], index: 6, kind: output, shape index: {}]  }
   0x1   :  { %2295 = sst [smem:[#allocation20_spill]] %s2284_s0 }
   0x2   :  { %2296 = sst [smem:[#allocation21_spill]] %s2286_s2 }
   0x3   :  { %2297 = sst [smem:[#allocation22_spill]] %s2287_s3 }
   0x4   :  { %11 = vsyncpa [#allocation3], 0 }
   0x5   :  { %13 = vsyncpa [#allocation3 + $0x1], 0 }
   0x6   :  { %14 = vsyncpa [#allocation6], 0 }
   0x7   :  { %16 = vsyncpa [#allocation6 + $0x1], 0 }
   0x8   :  { %17 = vsyncpa [#allocation9], 0 }
   0x9   :  { %18 = vsyncpa [#allocation12], 0 }
   0xa   :  { %19 = vsyncpa [#allocation4], 0 }
   0xb   :  { %21 = vsyncpa [#allocation4 + $0x1], 0  ;;  %s1801_s21 = smov 0   ;;  %s1803_s22 = smov 0  }
   0xc   :  { %s1805_s23 = smov 0   ;;  %s1807_s24 = smov 0  }
   0xd LB: > { %s1822_s25 = sadd.s32 4294967295, %s1749_s24   ;;  %s1189_s26 = sadd.s32 4294967294, %s1749_s24   ;;  %s1749_s24 = sphi %s1807_s24, %s2323_s24   ;;  %s1745_s23 = sphi %s1805_s23, %s2322_s23   ;;  %s1741_s22 = sphi %s1803_s22, %s2321_s22   ;;  %s1737_s21 = sphi %s1801_s21, %s2320_s21  }
   0xe   : > { %p47_p0 = scmp.ne.s32.totalorder %s1741_s22, %s1737_s21  ;;  %p2291_p1 = scmp.eq.s32.totalorder %s1822_s25, 0 }
   0xf   : > { %p187_p3 = scmp.eq.s32.totalorder %s1189_s26, 1  ;;  %p1190_p5 = scmp.ge.s32.totalorder %s1749_s24, 1 }
  0x10   : > { %p1831_p4 = por %p2291_p1, %p47_p0  ;;  %p194_p7 = scmp.lt.s32.totalorder %s1749_s24, 3 }
  0x11   : > { %p1836_p6 = por %p187_p3, %p47_p0  ;;  %s1751_s30 = smov [#allocation7]  }
  0x12   : > { %s2298_s27 = scalar_select %p1831_p4, 1, 0 }
  0x13   : > { %s2299_s28 = scalar_select %p1836_p6, 1, 0 }
  0x14   : > { %p1841_p8 = pnand %p1190_p5, %p194_p7  ;;  %s206_s7 = sshll.u32 %s1751_s30, 4  ;;  %s1845_s7 = int_to_ptr.vmem [resolvable:$true] %s206_s7 }
  0x15   : > { %s1752_s9 = smov [#allocation8]   ;;  %s1753_s11 = smov [#allocation10]  }
  0x16   : > { %s2300_s29 = scalar_select %p1841_p8, 1, 0 }
  0x17   : > { %p1399_p9 = pneg %p1841_p8  ;;  %s220_s10 = sshll.u32 %s1752_s9, 4  ;;  %s1856_s10 = int_to_ptr.vmem [resolvable:$true] %s220_s10 }
  0x18   : > { %s1858_s12 = sshll.u32 %s1753_s11, 4  ;;  %s2302_s2 = sld [smem:[#allocation21_spill]]  ;;  %s231_s12 = int_to_ptr.vmem [resolvable:$true] %s1858_s12 }
  0x19   : > { %p1852_p11 = pnand %p1399_p9, %p2291_p1 }
  0x1b   : > { %p1868_p13 = pneg %p1852_p11 }
  0x1e   : > { %s1495_s15 = scalar_lea.hbm %s2302_s2, 1024 }
  0x1f   : > { %p1496_p12 = scmp.ne.s32.totalorder %s2302_s2, %s1495_s15  ;;  %p1502_p5 = scmp.lt.u32.totalorder %s1495_s15, %s2302_s2 }
  0x21   : > { %p1498_p0 = pnand %p1868_p13, %p1496_p12 }
  0x23   : > { %p1499_p3 = pneg %p1498_p0 }
  0x25   : > { %p1504_p7 = pnand %p1502_p5, %p1499_p3 }
  0x27   : > { %1507 = shalt.err (!%p1504_p7)
}
  0x28   : > { %s1508_s26 = scalar_lea.vmem %s1845_s7, 1024  ;;  %p1516_p2 = scmp.lt.s32.totalorder %s1845_s7, %s1845_s7 }
  0x29   : > { %p1509_p9 = scmp.ne.s32.totalorder %s1845_s7, %s1508_s26  ;;  %p1517_p6 = scmp.lt.s32.totalorder %s1508_s26, %s1508_s26 }
  0x2b   : > { %p1511_p10 = pnand %p1509_p9, %p1868_p13  ;;  %p1518_p12 = por %p1517_p6, %p1516_p2 }
  0x2d   : > { %p1512_p1 = pneg %p1511_p10 }
  0x2f   : > { %p1519_p0 = pnand %p1518_p12, %p1512_p1 }
  0x31   : > { %1522 = shalt.err (!%p1519_p0)
}
  0x32   : > { %s1754_s30 = smov 64   ;;  %s1755_s9 = smov 4  }
  0x33   : > { %1402 = dma.hbm_to_vmem [thread:$0]  (!%p1852_p11), %s2302_s2, 1024, %s1845_s7, [#allocation6], %s1754_s30, %s1754_s30, %s1755_s9  }
  0x34   : > { %s2304_s3 = sld [smem:[#allocation22_spill]] }
  0x3a   : > { %s1523_s16 = scalar_lea.hbm %s2304_s3, 16 }
  0x3b   : > { %p1524_p1 = scmp.ne.s32.totalorder %s2304_s3, %s1523_s16  ;;  %p1530_p10 = scmp.lt.u32.totalorder %s1523_s16, %s2304_s3 }
  0x3d   : > { %p1526_p2 = pnand %p1524_p1, %p1868_p13 }
  0x3f   : > { %p1527_p6 = pneg %p1526_p2 }
  0x41   : > { %p1532_p3 = pnand %p1530_p10, %p1527_p6 }
  0x43   : > { %1535 = shalt.err (!%p1532_p3)
}
  0x44   : > { %s1536_s7 = scalar_lea.vmem %s1856_s10, 16  ;;  %s1543_s11 = scalar_lea.vmem %s1856_s10, 32 }
  0x45   : > { %p1537_p5 = scmp.ne.s32.totalorder %s1856_s10, %s1536_s7  ;;  %p1544_p12 = scmp.lt.s32.totalorder %s1856_s10, %s1856_s10 }
  0x46   : > { %p1545_p0 = scmp.lt.s32.totalorder %s1543_s11, %s1536_s7 }
  0x47   : > { %p1539_p7 = pnand %p1537_p5, %p1868_p13 }
  0x48   : > { %p1546_p1 = por %p1545_p0, %p1544_p12 }
  0x49   : > { %p1540_p9 = pneg %p1539_p7 }
  0x4b   : > { %p1547_p2 = pnand %p1546_p1, %p1540_p9 }
  0x4d   : > { %1550 = shalt.err (!%p1547_p2)
}
  0x4e   : > { %1405 = dma.hbm_to_vmem [thread:$0]  (!%p1852_p11), %s2304_s3, 16, %s1856_s10, [#allocation9]  }
  0x4f   : > { %s1551_s17 = scalar_lea.hbm %s2288_s4, 1024 }
  0x50   : > { %p1552_p6 = scmp.ne.s32.totalorder %s2288_s4, %s1551_s17  ;;  %p1558_p5 = scmp.lt.u32.totalorder %s1551_s17, %s2288_s4 }
  0x52   : > { %p1554_p10 = pnand %p1552_p6, %p1868_p13 }
  0x54   : > { %p1555_p3 = pneg %p1554_p10 }
  0x56   : > { %p1560_p7 = pnand %p1558_p5, %p1555_p3 }
  0x58   : > { %1563 = shalt.err (!%p1560_p7)
}
  0x59   : > { %s1564_s11 = scalar_lea.vmem %s231_s12, 1024  ;;  %p1572_p1 = scmp.lt.s32.totalorder %s231_s12, %s231_s12 }
  0x5a   : > { %p1565_p9 = scmp.ne.s32.totalorder %s231_s12, %s1564_s11  ;;  %p1573_p2 = scmp.lt.s32.totalorder %s1564_s11, %s1564_s11 }
  0x5c   : > { %p1567_p12 = pnand %p1565_p9, %p1868_p13  ;;  %p1574_p4 = por %p1573_p2, %p1572_p1 }
  0x5e   : > { %p1568_p0 = pneg %p1567_p12 }
  0x60   : > { %p1575_p8 = pnand %p1574_p4, %p1568_p0 }
  0x62   : > { %1578 = shalt.err (!%p1575_p8)
}
  0x63   : > { %1408 = dma.hbm_to_vmem [thread:$0]  (!%p1852_p11), %s2288_s4, 1024, %s231_s12, [#allocation9], %s1754_s30, %s1754_s30, %s1755_s9  }
  0x64   : > { %s1756_s14 = smov [#allocation11]   ;;  %s1579_s19 = scalar_lea.hbm %s2289_s5, 16 }
  0x65   : > { %s244_s15 = sshll.u32 %s1756_s14, 4  ;;  %p1580_p4 = scmp.ne.s32.totalorder %s2289_s5, %s1579_s19  ;;  %s245_s15 = int_to_ptr.vmem [resolvable:$true] %s244_s15 }
  0x66   : > { %p1586_p10 = scmp.lt.u32.totalorder %s1579_s19, %s2289_s5 }
  0x67   : > { %p1582_p8 = pnand %p1580_p4, %p1868_p13 }
  0x69   : > { %p1583_p6 = pneg %p1582_p8 }
  0x6b   : > { %p1588_p3 = pnand %p1586_p10, %p1583_p6 }
  0x6d   : > { %1591 = shalt.err (!%p1588_p3)
}
  0x6e   : > { %s1592_s12 = scalar_lea.vmem %s245_s15, 16  ;;  %s1599_s30 = scalar_lea.vmem %s245_s15, 32 }
  0x6f   : > { %p1593_p5 = scmp.ne.s32.totalorder %s245_s15, %s1592_s12  ;;  %p1600_p12 = scmp.lt.s32.totalorder %s245_s15, %s245_s15 }
  0x70   : > { %p1601_p0 = scmp.lt.s32.totalorder %s1599_s30, %s1592_s12 }
  0x71   : > { %p1595_p7 = pnand %p1593_p5, %p1868_p13 }
  0x72   : > { %p1602_p1 = por %p1601_p0, %p1600_p12 }
  0x73   : > { %p1596_p9 = pneg %p1595_p7 }
  0x75   : > { %p1603_p2 = pnand %p1602_p1, %p1596_p9 }
  0x77   : > { %1606 = shalt.err (!%p1603_p2)
}
  0x78   : > { %1411 = dma.hbm_to_vmem [thread:$0]  (!%p1852_p11), %s2289_s5, 16, %s245_s15, [#allocation12]  }
  0x79   : > { %s1957_s18 = sadd.s32 1, %s1749_s24   ;;  %s34_s8 = sadd.s32 1, %s1745_s23 }
  0x7a   : > { %s31_s13 = ssub.s32 %s1749_s24, %s1957_s18  ;;  %p41_p13 = scmp.ne.s32.totalorder %s1745_s23, %s1741_s22 }
  0x7b   : > { %p32_p4 = scmp.eq.s32.totalorder %s31_s13, 0  ;;  %p42_p8 = scmp.eq.s32.totalorder %s1749_s24, 0 }
  0x7c   : > { %p2305_p6 = scmp.eq.s32.totalorder %s1822_s25, 1  ;;  %p1427_p3 = scmp.lt.s32.totalorder %s1749_s24, 2 }
  0x7d   : > { %s1973_s16 = scalar_select %p32_p4, %s1745_s23, %s34_s8  }
  0x7e   : > { %p1967_p10 = por %p2305_p6, %p41_p13  ;;  %p43_p5 = por %p42_p8, %p41_p13 }
  0x7f   : > { %s255_s17 = sand.u32 1, %s1745_s23   ;;  %s2294_s19 = smul.u32 2432, %s1749_s24 }
  0x80   : > { %s1976_s15 = smul.u32 152, %s255_s17  ;;  %p1979_p11 = pnand %p1427_p3, %p43_p5 }
  0x81   : > { %s2308_s0 = sld [smem:[#allocation20_spill]]  ;;  %s276_s9 = sand.u32 1, %s1749_s24  }
  0x82   : > { %s259_s12 = scalar_lea.vmem [#allocation2], %s1976_s15  ;;  %s1994_s10 = scalar_lea.sflag [#allocation3], %s255_s17 }
  0x83   : > { %s266_s30 = sshll.u32 %s259_s12, 4  ;;  %p1609_p9 = pneg %p1979_p11  ;;  %s1991_s30 = int_to_ptr.vmem [resolvable:$true] %s266_s30 }
  0x87   : > { %s1988_s11 = scalar_lea.hbm %s2308_s0, %s2294_s19  ;;  %s1612_s7 = scalar_lea.hbm %s2308_s0, 4864 }
  0x88   : > { %s1607_s8 = scalar_lea.hbm %s1988_s11, 2432  ;;  %p1613_p1 = scmp.lt.u32.totalorder %s1988_s11, %s2308_s0 }
  0x89   : > { %p1608_p7 = scmp.ne.s32.totalorder %s1988_s11, %s1607_s8  ;;  %p1614_p2 = scmp.lt.u32.totalorder %s1612_s7, %s1607_s8 }
  0x8a   : > { %p1616_p4 = scmp.lt.u32.totalorder %s1607_s8, %s1988_s11 }
  0x8b   : > { %p1610_p12 = pnand %p1609_p9, %p1608_p7  ;;  %p1615_p13 = por %p1614_p2, %p1613_p1 }
  0x8d   : > { %p1611_p0 = pneg %p1610_p12  ;;  %p1617_p8 = por %p1616_p4, %p1615_p13 }
  0x8f   : > { %p1618_p6 = pnand %p1617_p8, %p1611_p0 }
  0x91   : > { %1621 = shalt.err (!%p1618_p6)
}
  0x92   : > { %s1622_s17 = scalar_lea.vmem %s1991_s30, 2432  ;;  %s1757_s12 = smov [#allocation2]  }
  0x93   : > { %p1623_p3 = scmp.ne.s32.totalorder %s1991_s30, %s1622_s17  ;;  %s1627_s13 = sshll.u32 %s1757_s12, 4  ;;  %s1628_s13 = int_to_ptr.vmem [resolvable:$false] %s1627_s13 }
  0x94   : > { %s1629_s2 = scalar_lea.vmem %s1628_s13, 4864  ;;  %p1630_p12 = scmp.lt.s32.totalorder %s1991_s30, %s1628_s13 }
  0x95   : > { %p1625_p5 = pnand %p1623_p3, %p1609_p9  ;;  %p1631_p1 = scmp.lt.s32.totalorder %s1629_s2, %s1622_s17 }
  0x97   : > { %p1626_p7 = pneg %p1625_p5  ;;  %p1632_p2 = por %p1631_p1, %p1630_p12 }
  0x99   : > { %p1633_p13 = pnand %p1632_p2, %p1626_p7 }
  0x9b   : > { %1636 = shalt.err (!%p1633_p13)
}
  0x9c   : > { %s1758_s19 = smov 128   ;;  %s1759_s8 = smov 8  }
  0x9d   : > { %1415 = dma.hbm_to_vmem [thread:$0]  (!%p1979_p11), %s1988_s11, 2432, %s1991_s30, %s1994_s10, %s1758_s19, %s1758_s19, %s1759_s8  }
  0x9e   : > { %s2309_s26 = smul.u32 2432, %s1749_s24  ;;  %s280_s13 = scalar_lea.vmem [#allocation5], %s1976_s15 }
  0x9f   : > { %s287_s2 = sshll.u32 %s280_s13, 4  ;;  %s2037_s0 = scalar_lea.sflag [#allocation6], %s276_s9  ;;  %s2033_s2 = int_to_ptr.vmem [resolvable:$true] %s287_s2 }
  0xa0   : > { %s2030_s12 = scalar_lea.hbm %s2285_s1, %s2309_s26  ;;  %s1642_s10 = scalar_lea.hbm %s2285_s1, 4864 }
  0xa1   : > { %s1637_s3 = scalar_lea.hbm %s2030_s12, 2432  ;;  %p1643_p6 = scmp.lt.u32.totalorder %s2030_s12, %s2285_s1 }
  0xa2   : > { %p1638_p0 = scmp.ne.s32.totalorder %s2030_s12, %s1637_s3  ;;  %p1644_p3 = scmp.lt.u32.totalorder %s1642_s10, %s1637_s3 }
  0xa3   : > { %p1646_p7 = scmp.lt.u32.totalorder %s1637_s3, %s2030_s12 }
  0xa4   : > { %p1640_p4 = pnand %p1638_p0, %p1609_p9  ;;  %p1645_p5 = por %p1644_p3, %p1643_p6 }
  0xa6   : > { %p1641_p8 = pneg %p1640_p4  ;;  %p1647_p12 = por %p1646_p7, %p1645_p5 }
  0xa8   : > { %p1648_p1 = pnand %p1647_p12, %p1641_p8 }
  0xaa   : > { %1651 = shalt.err (!%p1648_p1)
}
  0xab   : > { %s1652_s15 = scalar_lea.vmem %s2033_s2, 2432  ;;  %s1760_s9 = smov [#allocation5]  }
  0xac   : > { %p1653_p2 = scmp.ne.s32.totalorder %s2033_s2, %s1652_s15  ;;  %s1657_s17 = sshll.u32 %s1760_s9, 4  ;;  %s1658_s17 = int_to_ptr.vmem [resolvable:$false] %s1657_s17 }
  0xad   : > { %s1659_s13 = scalar_lea.vmem %s1658_s17, 4864  ;;  %p1660_p4 = scmp.lt.s32.totalorder %s2033_s2, %s1658_s17 }
  0xae   : > { %p1655_p13 = pnand %p1653_p2, %p1609_p9  ;;  %p1661_p6 = scmp.lt.s32.totalorder %s1659_s13, %s1652_s15 }
  0xb0   : > { %p1656_p0 = pneg %p1655_p13  ;;  %p1662_p3 = por %p1661_p6, %p1660_p4 }
  0xb2   : > { %p1663_p5 = pnand %p1662_p3, %p1656_p0 }
  0xb4   : > { %1666 = shalt.err (!%p1663_p5)
}
  0xb5   : > { %1418 = dma.hbm_to_vmem [thread:$0]  (!%p1979_p11), %s2030_s12, 2432, %s2033_s2, %s2037_s0, %s1758_s19, %s1758_s19, %s1759_s8  }
  0xb6   : > { %p2310_p9 = scmp.ne.s32.totalorder %s2300_s29, 0 }
  0xb7   : > { %s2069_s3 = sand.u32 (!%p2310_p9), 1, %s1741_s22   ;;  %p2311_p8 = scmp.ne.s32.totalorder (!%p2310_p9), %s2298_s27, 0 }
  0xb8   : > { %299 = sbr.rel (%p2310_p9) target bundleno = 864 (0x360), region = 44  ;;  %s302_s20 = scalar_lea.sflag (!%p2310_p9), [#allocation3], %s2069_s3 }
  0xb9   : > { %s2072_s11 = smul.u32 (!%p2310_p9), 152, %s2069_s3 }
  0xbb   : > { %s2076_s30 = scalar_lea.vmem (!%p2310_p9), [#allocation2], %s2072_s11 }
  0xbf   : > { %1712 = dma.done.wait (%p2311_p8), %s302_s20, 2432  }
  0xc0   : > { %1714 = vsyncadd (%p2311_p8), %s302_s20, 4294964864  ;;  %s310_s0 = sand.u32 1, %s1822_s25   ;;  %s2084_s19 = scalar_lea.vmem [#allocation5], %s2072_s11 }
  0xc1   : > { %s311_s29 = scalar_lea.sflag [#allocation6], %s310_s0 }
  0xc2   : > { %1716 = dma.done.wait (%p2311_p8), %s311_s29, 2432  }
  0xc3   : > { %1718 = vsyncadd (%p2311_p8), %s311_s29, 4294964864  ;;  %p2312_p11 = scmp.eq.s32.totalorder %s1822_s25, 0 }
  0xc5   : > { %1720 = dma.done.wait (%p2312_p11), [#allocation6], 1024   ;;  %p2313_p7 = pmov %p2312_p11 }
  0xc7   : > { %1722 = vsyncadd (%p2313_p7), [#allocation6], 4294966272  ;;  %p2314_p12 = pmov %p2313_p7 }
  0xc8   : > { %p2315_p1 = pmov %p2313_p7 }
  0xc9   : > { %1724 = dma.done.wait (%p2314_p12), [#allocation9], 1040  }
  0xca   : > { %1726 = vsyncadd (%p2315_p1), [#allocation9], 4294966256  ;;  %p2316_p2 = pmov %p2315_p1 }
  0xcb   : > { %p2317_p13 = pmov %p2315_p1 }
  0xcc   : > { %1728 = dma.done.wait (%p2316_p2), [#allocation12], 16  }
  0xcd   : > { %1730 = vsyncadd (%p2317_p13), [#allocation12], 4294967280  ;;  %v1761_v0 = vmov 0   ;;  %v465_v1 = vld [vmem:[%s2084_s19] sm:$0xff]  ;;  %v370_v2 = vld [vmem:[%s2076_s30] sm:$0xff]  ;;  %v368_v53 = vlaneseq  ;;  %s2212_s27 = scalar_lea.vmem [#allocation13], %s2072_s11 }
  0xce   : > { %1478 = vset.pattern.permute.xlu1 %v1761_v0  ;;  %1477 = vset.pattern.permute.xlu0 %v1761_v0  ;;  %v466_v3 = vld [vmem:[%s2084_s19 + $0x8] sm:$0xff]  ;;  %v371_v4 = vld [vmem:[%s2076_s30 + $0x8] sm:$0xff]  ;;  %v372_v6 = vld [vmem:[%s2076_s30 + $0x10] sm:$0xff]  ;;  %v1762_v60 = vmov 1.0|1.0   ;;  %s1265_s8 = smul.u32 2432, %s1822_s25 }
  0xcf   : > { %485 = vperm.xlu1 %1478, %v465_v1   ;;  %390 = vperm.xlu0 %1477, %v370_v2   ;;  %v373_v5 = vld [vmem:[%s2076_s30 + $0x18] sm:$0xff]  ;;  %v468_v7 = vld [vmem:[%s2084_s19 + $0x18] sm:$0xff]  ;;  %v467_v8 = vld [vmem:[%s2084_s19 + $0x10] sm:$0xff]  ;;  %v2140_v54 = vand.u32 127, %v368_v53  ;;  %s1055_s12 = sshll.u32 %s2212_s27, 4  ;;  %s1042_s25 = scalar_lea.sflag [#allocation4], %s2069_s3  ;;  %s2238_s12 = int_to_ptr.vmem [resolvable:$true] %s1055_s12 }
  0xd0   : > { %v375_v9 = vld [vmem:[%s2076_s30 + $0x28] sm:$0xff]  ;;  %v374_v10 = vld [vmem:[%s2076_s30 + $0x20] sm:$0xff]  ;;  %v470_v13 = vld [vmem:[%s2084_s19 + $0x28] sm:$0xff]  ;;  %s2236_s26 = scalar_lea.hbm %s2290_s6, %s1265_s8  ;;  %s1667_s7 = scalar_lea.vmem %s2238_s12, 2432 }
  0xd1   : > { %v1479_v11 = vld [vmem:[#allocation7] sm:$0xff]   ;;  %v1480_v12 = vld [vmem:[#allocation7 + $0x8] sm:$0xff]   ;;  %v1481_v15 = vld [vmem:[#allocation7 + $0x10] sm:$0xff]   ;;  %p1668_p0 = scmp.ne.s32.totalorder %s2238_s12, %s1667_s7  ;;  %s1763_s15 = smov [#allocation13]  }
  0xd2   : > { %1302 = vmatprep.subr.bf16.mxu0 %v1479_v11  ;;  %v469_v14 = vld [vmem:[%s2084_s19 + $0x20] sm:$0xff]  ;;  %v377_v16 = vld [vmem:[%s2076_s30 + $0x38] sm:$0xff]  ;;  %v472_v19 = vld [vmem:[%s2084_s19 + $0x38] sm:$0xff]  ;;  %s1671_s9 = sshll.u32 %s1763_s15, 4  ;;  %s1672_s9 = int_to_ptr.vmem [resolvable:$false] %s1671_s9 }
  0xd3   : > { %488 = vperm.xlu1 %1478, %v466_v3   ;;  %393 = vperm.xlu0 %1477, %v371_v4   ;;  %v376_v17 = vld [vmem:[%s2076_s30 + $0x30] sm:$0xff]  ;;  %v1482_v18 = vld [vmem:[#allocation7 + $0x18] sm:$0xff]   ;;  %v1483_v21 = vld [vmem:[#allocation7 + $0x20] sm:$0xff]   ;;  %p1669_p4 = pnand %p1668_p0, %p1967_p10  ;;  %s1673_s17 = scalar_lea.vmem %s1672_s9, 4864 }
  0xd4   : > { %1303 = vmatpush3.bf16.msra.mxu0 %v1479_v11  ;;  %v471_v20 = vld [vmem:[%s2084_s19 + $0x30] sm:$0xff]  ;;  %v379_v22 = vld [vmem:[%s2076_s30 + $0x48] sm:$0xff]  ;;  %v474_v25 = vld [vmem:[%s2084_s19 + $0x48] sm:$0xff]  ;;  %p1674_p3 = scmp.lt.s32.totalorder %s2238_s12, %s1672_s9  ;;  %p1675_p5 = scmp.lt.s32.totalorder %s1673_s17, %s1667_s7 }
  0xd5   : > { %1304 = vmatprep.subr.bf16.mxu0 %v1480_v12  ;;  %v378_v23 = vld [vmem:[%s2076_s30 + $0x40] sm:$0xff]  ;;  %v1484_v24 = vld [vmem:[#allocation7 + $0x28] sm:$0xff]   ;;  %v1485_v27 = vld [vmem:[#allocation7 + $0x30] sm:$0xff]   ;;  %p1670_p6 = pneg %p1669_p4 }
  0xd6   : > { %v473_v26 = vld [vmem:[%s2084_s19 + $0x40] sm:$0xff]  ;;  %v381_v28 = vld [vmem:[%s2076_s30 + $0x58] sm:$0xff]  ;;  %v476_v31 = vld [vmem:[%s2084_s19 + $0x58] sm:$0xff]  ;;  %p1676_p9 = por %p1675_p5, %p1674_p3 }
  0xd7   : > { %399 = vperm.xlu1 %1478, %v373_v5   ;;  %396 = vperm.xlu0 %1477, %v372_v6   ;;  %v380_v29 = vld [vmem:[%s2076_s30 + $0x50] sm:$0xff]  ;;  %v1486_v30 = vld [vmem:[#allocation7 + $0x38] sm:$0xff]   ;;  %v383_v33 = vld [vmem:[%s2076_s30 + $0x68] sm:$0xff] }
  0xd8   : > { %1305 = vmatpush3.bf16.msra.mxu0 %v1480_v12  ;;  %v475_v32 = vld [vmem:[%s2084_s19 + $0x50] sm:$0xff]  ;;  %v478_v35 = vld [vmem:[%s2084_s19 + $0x68] sm:$0xff]  ;;  %v477_v36 = vld [vmem:[%s2084_s19 + $0x60] sm:$0xff]  ;;  %p1677_p8 = pnand %p1676_p9, %p1670_p6 }
  0xd9   : > { %1306 = vmatprep.subr.bf16.mxu0 %v1481_v15  ;;  %v382_v34 = vld [vmem:[%s2076_s30 + $0x60] sm:$0xff]  ;;  %v385_v37 = vld [vmem:[%s2076_s30 + $0x78] sm:$0xff]  ;;  %v384_v38 = vld [vmem:[%s2076_s30 + $0x70] sm:$0xff] }
  0xda   : > { %v480_v39 = vld [vmem:[%s2084_s19 + $0x78] sm:$0xff]  ;;  %v479_v40 = vld [vmem:[%s2084_s19 + $0x70] sm:$0xff]  ;;  %v482_v43 = vld [vmem:[%s2084_s19 + $0x88] sm:$0xff] }
  0xdb   : > { %494 = vperm.xlu1 %1478, %v468_v7   ;;  %491 = vperm.xlu0 %1477, %v467_v8   ;;  %v387_v41 = vld [vmem:[%s2076_s30 + $0x88] sm:$0xff]  ;;  %v386_v42 = vld [vmem:[%s2076_s30 + $0x80] sm:$0xff]  ;;  %v481_v44 = vld [vmem:[%s2084_s19 + $0x80] sm:$0xff] }
  0xdc   : > { %1307 = vmatpush3.bf16.msra.mxu0 %v1481_v15  ;;  %v483_v45 = vld [vmem:[%s2084_s19 + $0x90] sm:$0xff]  ;;  %v388_v46 = vld [vmem:[%s2076_s30 + $0x90] sm:$0xff] }
  0xdd   : > { %1308 = vmatprep.subr.bf16.mxu0 %v1482_v18  ;;  %v1487_v47 = vld [vmem:[#allocation10] sm:$0xff]   ;;  %v1488_v48 = vld [vmem:[#allocation10 + $0x8] sm:$0xff]   ;;  %v1489_v49 = vld [vmem:[#allocation10 + $0x10] sm:$0xff]  }
  0xde   : > { %1338 = vmatprep.subr.bf16.mxu1 %v1487_v47  ;;  %v1490_v50 = vld [vmem:[#allocation10 + $0x18] sm:$0xff]   ;;  %v1491_v51 = vld [vmem:[#allocation10 + $0x20] sm:$0xff]   ;;  %v1492_v52 = vld [vmem:[#allocation10 + $0x28] sm:$0xff]  }
  0xdf   : > { %405 = vperm.xlu1 %1478, %v375_v9   ;;  %402 = vperm.xlu0 %1477, %v374_v10  }
  0xe0   : > { %1309 = vmatpush3.bf16.msra.mxu0 %v1482_v18  ;;  %1339 = vmatpush3.bf16.msra.mxu1 %v1487_v47 }
  0xe1   : > { %1310 = vmatprep.subr.bf16.mxu0 %v1483_v21  ;;  %1340 = vmatprep.subr.bf16.mxu1 %v1488_v48 }
  0xe3   : > { %500 = vperm.xlu1 %1478, %v470_v13   ;;  %497 = vperm.xlu0 %1477, %v469_v14  }
  0xe4   : > { %1311 = vmatpush3.bf16.msra.mxu0 %v1483_v21  ;;  %1341 = vmatpush3.bf16.msra.mxu1 %v1488_v48 }
  0xe5   : > { %1312 = vmatprep.subr.bf16.mxu0 %v1484_v24  ;;  %1342 = vmatprep.subr.bf16.mxu1 %v1489_v49 }
  0xe7   : > { %411 = vperm.xlu1 %1478, %v377_v16   ;;  %408 = vperm.xlu0 %1477, %v376_v17  }
  0xe8   : > { %1313 = vmatpush3.bf16.msra.mxu0 %v1484_v24  ;;  %1343 = vmatpush3.bf16.msra.mxu1 %v1489_v49 }
  0xe9   : > { %1314 = vmatprep.subr.bf16.mxu0 %v1485_v27  ;;  %1344 = vmatprep.subr.bf16.mxu1 %v1490_v50 }
  0xeb   : > { %506 = vperm.xlu1 %1478, %v472_v19   ;;  %503 = vperm.xlu0 %1477, %v471_v20  }
  0xec   : > { %1315 = vmatpush3.bf16.msra.mxu0 %v1485_v27  ;;  %1345 = vmatpush3.bf16.msra.mxu1 %v1490_v50 }
  0xed   : > { %1316 = vmatprep.subr.bf16.mxu0 %v1486_v30  ;;  %1346 = vmatprep.subr.bf16.mxu1 %v1491_v51 }
  0xef   : > { %417 = vperm.xlu1 %1478, %v379_v22   ;;  %414 = vperm.xlu0 %1477, %v378_v23  }
  0xf0   : > { %1317 = vmatpush3.bf16.msra.mxu0 %v1486_v30  ;;  %1347 = vmatpush3.bf16.msra.mxu1 %v1491_v51  ;;  %v1493_v30 = vld [vmem:[#allocation10 + $0x30] sm:$0xff]  }
  0xf1   : > { %1348 = vmatprep.subr.bf16.mxu1 %v1492_v52 }
  0xf3   : > { %512 = vperm.xlu1 %1478, %v474_v25   ;;  %509 = vperm.xlu0 %1477, %v473_v26  }
  0xf4   : > { %1349 = vmatpush3.bf16.msra.mxu1 %v1492_v52 }
  0xf5   : > { %1350 = vmatprep.subr.bf16.mxu1 %v1493_v30 }
  0xf7   : > { %423 = vperm.xlu1 %1478, %v381_v28   ;;  %420 = vperm.xlu0 %1477, %v380_v29  }
  0xf8   : > { %1351 = vmatpush3.bf16.msra.mxu1 %v1493_v30 }
  0xfb   : > { %518 = vperm.xlu1 %1478, %v476_v31   ;;  %515 = vperm.xlu0 %1477, %v475_v32   ;;  %v1494_v31 = vld [vmem:[#allocation10 + $0x38] sm:$0xff]  }
  0xfc   : > { %1352 = vmatprep.subr.bf16.mxu1 %v1494_v31  ;;  %v2190_v32 = vld [vmem:[#allocation8] ss:$0 sm:$0xff] }
  0xfd   : > { %1353 = vmatpush3.bf16.msra.mxu1 %v1494_v31 }
  0xff   : > { %429 = vperm.xlu1 %1478, %v383_v33   ;;  %426 = vperm.xlu0 %1477, %v382_v34  }
 0x103   : > { %524 = vperm.xlu1 %1478, %v478_v35   ;;  %521 = vperm.xlu0 %1477, %v477_v36  }
 0x107   : > { %435 = vperm.xlu1 %1478, %v385_v37   ;;  %432 = vperm.xlu0 %1477, %v384_v38  }
 0x10b   : > { %530 = vperm.xlu1 %1478, %v480_v39   ;;  %527 = vperm.xlu0 %1477, %v479_v40  }
 0x10f   : > { %441 = vperm.xlu1 %1478, %v387_v41   ;;  %438 = vperm.xlu0 %1477, %v386_v42  }
 0x113   : > { %536 = vperm.xlu1 %1478, %v482_v43   ;;  %533 = vperm.xlu0 %1477, %v481_v44  }
 0x117   : > { %539 = vperm.xlu1 %1478, %v483_v45   ;;  %444 = vperm.xlu0 %1477, %v388_v46  }
 0x14e   : > { %v486_v55 = vpop.permute.xlu1 %485  ;;  %v391_v56 = vpop.permute.xlu0 %390 }
 0x14f   : > { %vm541_vm0 = vcmp.eq.s32.totalorder %v2140_v54, %v486_v55  ;;  %vm446_vm1 = vcmp.eq.s32.totalorder %v2140_v54, %v391_v56 }
 0x150   : > { %vm560_vm4 = vmor %vm446_vm1, %vm541_vm0 }
 0x152   : > { %v489_v57 = vpop.permute.xlu1 %488  ;;  %v394_v58 = vpop.permute.xlu0 %393 }
 0x153   : > { %vm542_vm2 = vcmp.eq.s32.totalorder %v2140_v54, %v489_v57  ;;  %vm447_vm3 = vcmp.eq.s32.totalorder %v2140_v54, %v394_v58 }
 0x154   : > { %vm561_vm5 = vmor %vm447_vm3, %vm542_vm2 }
 0x155   : > { %vm1231_vm6 = vmpackc.low %vm561_vm5, %vm560_vm4 }
 0x156   : > { %v400_v59 = vpop.permute.xlu1 %399  ;;  %1318 = vmatprep.mubr.msk.bf16.mxu0 %vm1231_vm6, %v1762_v60  ;;  %v397_v61 = vpop.permute.xlu0 %396 }
 0x157   : > { %vm449_vm7 = vcmp.eq.s32.totalorder %v2140_v54, %v400_v59  ;;  %vm448_vm10 = vcmp.eq.s32.totalorder %v2140_v54, %v397_v61 }
 0x15a   : > { %v495_v62 = vpop.permute.xlu1 %494  ;;  %v492_v63 = vpop.permute.xlu0 %491 }
 0x15b   : > { %vm544_vm8 = vcmp.eq.s32.totalorder %v2140_v54, %v495_v62  ;;  %vm543_vm9 = vcmp.eq.s32.totalorder %v2140_v54, %v492_v63 }
 0x15c   : > { %vm563_vm11 = vmor %vm449_vm7, %vm544_vm8 }
 0x15d   : > { %vm562_vm12 = vmor %vm448_vm10, %vm543_vm9 }
 0x15e   : > { %vm1233_vm13 = vmpackc.low %vm563_vm11, %vm562_vm12  ;;  %v406_v0 = vpop.permute.xlu1 %405  ;;  %v403_v1 = vpop.permute.xlu0 %402 }
 0x15f   : > { %1319 = vmatmul.mubr.msk.bf16.vlgmr.msra.gmra.mrb[0].mxu0 %vm1233_vm13, %v1762_v60  ;;  %vm451_vm14 = vcmp.eq.s32.totalorder %v2140_v54, %v406_v0  ;;  %vm450_vm1 = vcmp.eq.s32.totalorder %v2140_v54, %v403_v1 }
 0x162   : > { %v501_v2 = vpop.permute.xlu1 %500  ;;  %v498_v3 = vpop.permute.xlu0 %497 }
 0x163   : > { %vm546_vm15 = vcmp.eq.s32.totalorder %v2140_v54, %v501_v2  ;;  %vm545_vm0 = vcmp.eq.s32.totalorder %v2140_v54, %v498_v3 }
 0x164   : > { %vm565_vm2 = vmor %vm451_vm14, %vm546_vm15 }
 0x165   : > { %vm564_vm3 = vmor %vm450_vm1, %vm545_vm0 }
 0x166   : > { %vm1235_vm4 = vmpackc.low %vm565_vm2, %vm564_vm3  ;;  %v412_v4 = vpop.permute.xlu1 %411  ;;  %v409_v5 = vpop.permute.xlu0 %408 }
 0x167   : > { %1322 = vmatprep.mubr.msk.bf16.mxu0 %vm1235_vm4, %v1762_v60  ;;  %vm453_vm5 = vcmp.eq.s32.totalorder %v2140_v54, %v412_v4  ;;  %vm452_vm8 = vcmp.eq.s32.totalorder %v2140_v54, %v409_v5 }
 0x16a   : > { %v507_v6 = vpop.permute.xlu1 %506  ;;  %v504_v7 = vpop.permute.xlu0 %503 }
 0x16b   : > { %vm548_vm6 = vcmp.eq.s32.totalorder %v2140_v54, %v507_v6  ;;  %vm547_vm7 = vcmp.eq.s32.totalorder %v2140_v54, %v504_v7 }
 0x16c   : > { %vm567_vm9 = vmor %vm453_vm5, %vm548_vm6 }
 0x16d   : > { %vm566_vm10 = vmor %vm452_vm8, %vm547_vm7 }
 0x16e   : > { %vm1237_vm11 = vmpackc.low %vm567_vm9, %vm566_vm10  ;;  %v418_v8 = vpop.permute.xlu1 %417  ;;  %v415_v9 = vpop.permute.xlu0 %414 }
 0x16f   : > { %1323 = vmatmul.mubr.msk.bf16.gmra.mrb[4].mxu0 %vm1237_vm11, %v1762_v60  ;;  %vm455_vm12 = vcmp.eq.s32.totalorder %v2140_v54, %v418_v8  ;;  %vm454_vm15 = vcmp.eq.s32.totalorder %v2140_v54, %v415_v9 }
 0x172   : > { %v513_v10 = vpop.permute.xlu1 %512  ;;  %v510_v11 = vpop.permute.xlu0 %509 }
 0x173   : > { %vm550_vm13 = vcmp.eq.s32.totalorder %v2140_v54, %v513_v10  ;;  %vm549_vm14 = vcmp.eq.s32.totalorder %v2140_v54, %v510_v11 }
 0x174   : > { %vm569_vm0 = vmor %vm455_vm12, %vm550_vm13 }
 0x175   : > { %vm568_vm1 = vmor %vm454_vm15, %vm549_vm14 }
 0x176   : > { %vm1239_vm2 = vmpackc.low %vm569_vm0, %vm568_vm1  ;;  %v424_v12 = vpop.permute.xlu1 %423  ;;  %v421_v13 = vpop.permute.xlu0 %420 }
 0x177   : > { %1326 = vmatprep.mubr.msk.bf16.mxu0 %vm1239_vm2, %v1762_v60  ;;  %vm457_vm3 = vcmp.eq.s32.totalorder %v2140_v54, %v424_v12  ;;  %vm456_vm6 = vcmp.eq.s32.totalorder %v2140_v54, %v421_v13 }
 0x17a   : > { %v519_v14 = vpop.permute.xlu1 %518  ;;  %v516_v15 = vpop.permute.xlu0 %515 }
 0x17b   : > { %vm552_vm4 = vcmp.eq.s32.totalorder %v2140_v54, %v519_v14  ;;  %vm551_vm5 = vcmp.eq.s32.totalorder %v2140_v54, %v516_v15 }
 0x17c   : > { %vm571_vm7 = vmor %vm457_vm3, %vm552_vm4 }
 0x17d   : > { %vm570_vm8 = vmor %vm456_vm6, %vm551_vm5 }
 0x17e   : > { %vm1241_vm9 = vmpackc.low %vm571_vm7, %vm570_vm8  ;;  %v430_v16 = vpop.permute.xlu1 %429  ;;  %v427_v17 = vpop.permute.xlu0 %426 }
 0x17f   : > { %1327 = vmatmul.mubr.msk.bf16.gmra.mrb[8].mxu0 %vm1241_vm9, %v1762_v60  ;;  %vm459_vm10 = vcmp.eq.s32.totalorder %v2140_v54, %v430_v16  ;;  %vm458_vm13 = vcmp.eq.s32.totalorder %v2140_v54, %v427_v17 }
 0x182   : > { %v525_v18 = vpop.permute.xlu1 %524  ;;  %v522_v19 = vpop.permute.xlu0 %521 }
 0x183   : > { %vm554_vm11 = vcmp.eq.s32.totalorder %v2140_v54, %v525_v18  ;;  %vm553_vm12 = vcmp.eq.s32.totalorder %v2140_v54, %v522_v19 }
 0x184   : > { %vm573_vm14 = vmor %vm459_vm10, %vm554_vm11 }
 0x185   : > { %vm572_vm15 = vmor %vm458_vm13, %vm553_vm12 }
 0x186   : > { %vm1243_vm0 = vmpackc.low %vm573_vm14, %vm572_vm15  ;;  %v436_v20 = vpop.permute.xlu1 %435  ;;  %v433_v21 = vpop.permute.xlu0 %432 }
 0x187   : > { %1330 = vmatprep.mubr.msk.bf16.mxu0 %vm1243_vm0, %v1762_v60  ;;  %vm461_vm1 = vcmp.eq.s32.totalorder %v2140_v54, %v436_v20  ;;  %vm460_vm4 = vcmp.eq.s32.totalorder %v2140_v54, %v433_v21 }
 0x18a   : > { %v531_v22 = vpop.permute.xlu1 %530  ;;  %v528_v23 = vpop.permute.xlu0 %527 }
 0x18b   : > { %vm556_vm2 = vcmp.eq.s32.totalorder %v2140_v54, %v531_v22  ;;  %vm555_vm3 = vcmp.eq.s32.totalorder %v2140_v54, %v528_v23 }
 0x18c   : > { %vm575_vm5 = vmor %vm461_vm1, %vm556_vm2 }
 0x18d   : > { %vm574_vm6 = vmor %vm460_vm4, %vm555_vm3 }
 0x18e   : > { %vm1245_vm7 = vmpackc.low %vm575_vm5, %vm574_vm6  ;;  %v442_v24 = vpop.permute.xlu1 %441  ;;  %v439_v25 = vpop.permute.xlu0 %438 }
 0x18f   : > { %1331 = vmatmul.mubr.msk.bf16.gmra.mrb[12].mxu0 %vm1245_vm7, %v1762_v60  ;;  %vm463_vm8 = vcmp.eq.s32.totalorder %v2140_v54, %v442_v24  ;;  %vm462_vm11 = vcmp.eq.s32.totalorder %v2140_v54, %v439_v25 }
 0x192   : > { %v537_v26 = vpop.permute.xlu1 %536  ;;  %v534_v27 = vpop.permute.xlu0 %533 }
 0x193   : > { %vm558_vm9 = vcmp.eq.s32.totalorder %v2140_v54, %v537_v26  ;;  %vm557_vm10 = vcmp.eq.s32.totalorder %v2140_v54, %v534_v27 }
 0x194   : > { %vm577_vm12 = vmor %vm463_vm8, %vm558_vm9 }
 0x195   : > { %vm576_vm13 = vmor %vm462_vm11, %vm557_vm10 }
 0x196   : > { %vm1247_vm14 = vmpackc.low %vm577_vm12, %vm576_vm13  ;;  %v540_v28 = vpop.permute.xlu1 %539  ;;  %v445_v29 = vpop.permute.xlu0 %444 }
 0x197   : > { %vm559_vm15 = vcmp.eq.s32.totalorder %v2140_v54, %v540_v28  ;;  %1334 = vmatprep.mubr.msk.bf16.mxu0 %vm1247_vm14, %v1762_v60  ;;  %vm464_vm0 = vcmp.eq.s32.totalorder %v2140_v54, %v445_v29 }
 0x198   : > { %vm578_vm1 = vmor %vm464_vm0, %vm559_vm15 }
 0x199   : > { %vm1249_vm2 = vmpackc.low %vm578_vm1, %vm578_vm1 }
 0x19a   : > { %1335 = vmatmul.mubr.msk.bf16.gmra.mrb[16].mxu0 %vm1249_vm2, %v1762_v60 }
 0x232   : > { %v1320_v33 = vpop.f32.mrb[0].mxu0 }
 0x233   : > { %v741_v34 = vadd.f32 %v1320_v33, %v2190_v32  ;;  %v732_v35 = vpop.f32.mrb[1].mxu0 }
 0x234   : > { %v733_v36 = vadd.f32 %v2190_v32, %v732_v35  ;;  %v1321_v37 = vpop.f32.mrb[2].mxu0 }
 0x235   : > { %v744_v38 = vadd.f32 %v1321_v37, %v2190_v32  ;;  %v735_v39 = vpop.f32.mrb[3].mxu0  ;;  %v812_v41 = vmax.f32 %v741_v34, 0.0 }
 0x236   : > { %v736_v40 = vadd.f32 %v2190_v32, %v735_v39  ;;  %v810_v43 = vmax.f32 %v733_v36, 0.0 }
 0x237   : > { %v813_v42 = vmax.f32 %v744_v38, 0.0  ;;  %v1251_v38 = vld [vmem:[#allocation11] ss:$0 sm:$0xff] }
 0x238   : > { %v811_v44 = vmax.f32 %v736_v40, 0.0 }
 0x239   : > { %v830_v45 = vpack.c.bf16 %v813_v42, %v812_v41 }
 0x23a   : > { %v829_v46 = vpack.c.bf16 %v811_v44, %v810_v43 }
 0x23c   : > { %1354 = vmatprep.mubr.bf16.mxu1 %v829_v46 }
 0x23d   : > { %1355 = vmatmul.mubr.bf16.vlgmr.msra.gmra.mrb[0].mxu1 %v830_v45 }
 0x242   : > { %v1324_v47 = vpop.f32.mrb[4].mxu0 }
 0x243   : > { %v757_v48 = vadd.f32 %v1324_v47, %v2190_v32  ;;  %v748_v49 = vpop.f32.mrb[5].mxu0 }
 0x244   : > { %v749_v50 = vadd.f32 %v2190_v32, %v748_v49  ;;  %v1325_v51 = vpop.f32.mrb[6].mxu0 }
 0x245   : > { %v760_v52 = vadd.f32 %v1325_v51, %v2190_v32  ;;  %v751_v53 = vpop.f32.mrb[7].mxu0  ;;  %v816_v55 = vmax.f32 %v757_v48, 0.0 }
 0x246   : > { %v752_v54 = vadd.f32 %v2190_v32, %v751_v53  ;;  %v814_v57 = vmax.f32 %v749_v50, 0.0 }
 0x247   : > { %v817_v56 = vmax.f32 %v760_v52, 0.0 }
 0x248   : > { %v815_v58 = vmax.f32 %v752_v54, 0.0 }
 0x249   : > { %v832_v59 = vpack.c.bf16 %v817_v56, %v816_v55 }
 0x24a   : > { %v831_v60 = vpack.c.bf16 %v815_v58, %v814_v57 }
 0x24c   : > { %1358 = vmatprep.mubr.bf16.mxu1 %v831_v60 }
 0x24d   : > { %1359 = vmatmul.mubr.bf16.gmra.mrb[4].mxu1 %v832_v59 }
 0x252   : > { %v1328_v61 = vpop.f32.mrb[8].mxu0 }
 0x253   : > { %v773_v62 = vadd.f32 %v1328_v61, %v2190_v32  ;;  %v764_v63 = vpop.f32.mrb[9].mxu0 }
 0x254   : > { %v765_v0 = vadd.f32 %v2190_v32, %v764_v63  ;;  %v1329_v1 = vpop.f32.mrb[10].mxu0 }
 0x255   : > { %v776_v2 = vadd.f32 %v1329_v1, %v2190_v32  ;;  %v767_v3 = vpop.f32.mrb[11].mxu0  ;;  %v820_v5 = vmax.f32 %v773_v62, 0.0 }
 0x256   : > { %v768_v4 = vadd.f32 %v2190_v32, %v767_v3  ;;  %v818_v7 = vmax.f32 %v765_v0, 0.0 }
 0x257   : > { %v821_v6 = vmax.f32 %v776_v2, 0.0 }
 0x258   : > { %v819_v8 = vmax.f32 %v768_v4, 0.0 }
 0x259   : > { %v834_v9 = vpack.c.bf16 %v821_v6, %v820_v5 }
 0x25a   : > { %v833_v10 = vpack.c.bf16 %v819_v8, %v818_v7 }
 0x25c   : > { %1362 = vmatprep.mubr.bf16.mxu1 %v833_v10 }
 0x25d   : > { %1363 = vmatmul.mubr.bf16.gmra.mrb[8].mxu1 %v834_v9 }
 0x262   : > { %v1332_v11 = vpop.f32.mrb[12].mxu0 }
 0x263   : > { %v789_v12 = vadd.f32 %v1332_v11, %v2190_v32  ;;  %v780_v13 = vpop.f32.mrb[13].mxu0 }
 0x264   : > { %v781_v14 = vadd.f32 %v2190_v32, %v780_v13  ;;  %v1333_v15 = vpop.f32.mrb[14].mxu0 }
 0x265   : > { %v792_v16 = vadd.f32 %v1333_v15, %v2190_v32  ;;  %v783_v17 = vpop.f32.mrb[15].mxu0  ;;  %v824_v19 = vmax.f32 %v789_v12, 0.0 }
 0x266   : > { %v784_v18 = vadd.f32 %v2190_v32, %v783_v17  ;;  %v822_v21 = vmax.f32 %v781_v14, 0.0 }
 0x267   : > { %v825_v20 = vmax.f32 %v792_v16, 0.0 }
 0x268   : > { %v823_v22 = vmax.f32 %v784_v18, 0.0 }
 0x269   : > { %v836_v23 = vpack.c.bf16 %v825_v20, %v824_v19 }
 0x26a   : > { %v835_v24 = vpack.c.bf16 %v823_v22, %v822_v21 }
 0x26c   : > { %1366 = vmatprep.mubr.bf16.mxu1 %v835_v24 }
 0x26d   : > { %1367 = vmatmul.mubr.bf16.gmra.mrb[12].mxu1 %v836_v23  ;;  %v1336_v25 = vpop.f32.mrb[16].mxu0 }
 0x26e   : > { %v805_v26 = vadd.f32 %v1336_v25, %v2190_v32  ;;  %v796_v27 = vpop.f32.mrb[17].mxu0 }
 0x26f   : > { %v797_v28 = vadd.f32 %v2190_v32, %v796_v27  ;;  %v1337_v29 = vpop.f32.mrb[18].mxu0 }
 0x270   : > { %v799_v30 = vpop.f32.mrb[19].mxu0  ;;  %v828_v33 = vmax.f32 %v805_v26, 0.0 }
 0x271   : > { %v800_v31 = vadd.f32 %v2190_v32, %v799_v30  ;;  %v826_v34 = vmax.f32 %v797_v28, 0.0 }
 0x272   : > { %v838_v37 = vpack.c.bf16 %v828_v33, %v828_v33 }
 0x273   : > { %v827_v35 = vmax.f32 %v800_v31, 0.0 }
 0x275   : > { %v837_v36 = vpack.c.bf16 %v827_v35, %v826_v34 }
 0x277   : > { %1370 = vmatprep.mubr.bf16.mxu1 %v837_v36 }
 0x278   : > { %1371 = vmatmul.mubr.bf16.gmra.mrb[16].mxu1 %v838_v37 }
 0x310   : > { %v1356_v39 = vpop.f32.mrb[0].mxu1 }
 0x311   : > { %v953_v40 = vadd.f32 %v1356_v39, %v1251_v38  ;;  %v944_v41 = vpop.f32.mrb[1].mxu1 }
 0x312   : > { %v945_v42 = vadd.f32 %v1251_v38, %v944_v41  ;;  %v1357_v43 = vpop.f32.mrb[2].mxu1 }
 0x313   : > { %1024 = vst [vmem:[%s2212_s27 + $0x10] sm:$0xff] %v953_v40  ;;  %v956_v32 = vadd.f32 %v1357_v43, %v1251_v38  ;;  %v947_v44 = vpop.f32.mrb[3].mxu1 }
 0x314   : > { %1022 = vst [vmem:[%s2212_s27] sm:$0xff] %v945_v42  ;;  %v948_v45 = vadd.f32 %v1251_v38, %v947_v44 }
 0x315   : > { %1025 = vst [vmem:[%s2212_s27 + $0x18] sm:$0xff] %v956_v32 }
 0x316   : > { %1023 = vst [vmem:[%s2212_s27 + $0x8] sm:$0xff] %v948_v45 }
 0x320   : > { %v1360_v46 = vpop.f32.mrb[4].mxu1 }
 0x321   : > { %v969_v47 = vadd.f32 %v1360_v46, %v1251_v38  ;;  %v960_v48 = vpop.f32.mrb[5].mxu1 }
 0x322   : > { %v961_v49 = vadd.f32 %v1251_v38, %v960_v48  ;;  %v1361_v50 = vpop.f32.mrb[6].mxu1 }
 0x323   : > { %1028 = vst [vmem:[%s2212_s27 + $0x30] sm:$0xff] %v969_v47  ;;  %v972_v51 = vadd.f32 %v1361_v50, %v1251_v38  ;;  %v963_v52 = vpop.f32.mrb[7].mxu1 }
 0x324   : > { %1026 = vst [vmem:[%s2212_s27 + $0x20] sm:$0xff] %v961_v49  ;;  %v964_v53 = vadd.f32 %v1251_v38, %v963_v52 }
 0x325   : > { %1029 = vst [vmem:[%s2212_s27 + $0x38] sm:$0xff] %v972_v51 }
 0x326   : > { %1027 = vst [vmem:[%s2212_s27 + $0x28] sm:$0xff] %v964_v53 }
 0x330   : > { %v1364_v54 = vpop.f32.mrb[8].mxu1 }
 0x331   : > { %v985_v55 = vadd.f32 %v1364_v54, %v1251_v38  ;;  %v976_v56 = vpop.f32.mrb[9].mxu1 }
 0x332   : > { %v977_v57 = vadd.f32 %v1251_v38, %v976_v56  ;;  %v1365_v58 = vpop.f32.mrb[10].mxu1 }
 0x333   : > { %1032 = vst [vmem:[%s2212_s27 + $0x50] sm:$0xff] %v985_v55  ;;  %v988_v59 = vadd.f32 %v1365_v58, %v1251_v38  ;;  %v979_v60 = vpop.f32.mrb[11].mxu1 }
 0x334   : > { %1030 = vst [vmem:[%s2212_s27 + $0x40] sm:$0xff] %v977_v57  ;;  %v980_v61 = vadd.f32 %v1251_v38, %v979_v60 }
 0x335   : > { %1033 = vst [vmem:[%s2212_s27 + $0x58] sm:$0xff] %v988_v59 }
 0x336   : > { %1031 = vst [vmem:[%s2212_s27 + $0x48] sm:$0xff] %v980_v61 }
 0x340   : > { %v1368_v62 = vpop.f32.mrb[12].mxu1 }
 0x341   : > { %v1001_v63 = vadd.f32 %v1368_v62, %v1251_v38  ;;  %v992_v0 = vpop.f32.mrb[13].mxu1 }
 0x342   : > { %v993_v1 = vadd.f32 %v1251_v38, %v992_v0  ;;  %v1369_v2 = vpop.f32.mrb[14].mxu1 }
 0x343   : > { %1036 = vst [vmem:[%s2212_s27 + $0x70] sm:$0xff] %v1001_v63  ;;  %v1004_v3 = vadd.f32 %v1369_v2, %v1251_v38  ;;  %v995_v4 = vpop.f32.mrb[15].mxu1 }
 0x344   : > { %1034 = vst [vmem:[%s2212_s27 + $0x60] sm:$0xff] %v993_v1  ;;  %v996_v5 = vadd.f32 %v1251_v38, %v995_v4 }
 0x345   : > { %1037 = vst [vmem:[%s2212_s27 + $0x78] sm:$0xff] %v1004_v3 }
 0x346   : > { %1035 = vst [vmem:[%s2212_s27 + $0x68] sm:$0xff] %v996_v5 }
 0x34b   : > { %v1372_v6 = vpop.f32.mrb[16].mxu1 }
 0x34c   : > { %v1017_v7 = vadd.f32 %v1372_v6, %v1251_v38  ;;  %v1008_v8 = vpop.f32.mrb[17].mxu1 }
 0x34d   : > { %v1009_v9 = vadd.f32 %v1251_v38, %v1008_v8  ;;  %v1373_v10 = vpop.f32.mrb[18].mxu1 }
 0x34e   : > { %1040 = vst [vmem:[%s2212_s27 + $0x90] sm:$0xff] %v1017_v7  ;;  %v1011_v11 = vpop.f32.mrb[19].mxu1 }
 0x34f   : > { %1038 = vst [vmem:[%s2212_s27 + $0x80] sm:$0xff] %v1009_v9  ;;  %v1012_v12 = vadd.f32 %v1251_v38, %v1011_v11 }
 0x351   : > { %1039 = vst [vmem:[%s2212_s27 + $0x88] sm:$0xff] %v1012_v12 }
 0x352   : > { %1680 = shalt.err (!%p1677_p8)
}
 0x353   : > { %s1681_s13 = scalar_lea.hbm %s2236_s26, 2432  ;;  %s1685_s30 = scalar_lea.hbm %s2290_s6, 4864 }
 0x354   : > { %p1682_p11 = scmp.ne.s32.totalorder %s2236_s26, %s1681_s13  ;;  %p1686_p1 = scmp.lt.u32.totalorder %s2236_s26, %s2290_s6 }
 0x355   : > { %p1687_p2 = scmp.lt.u32.totalorder %s1685_s30, %s1681_s13  ;;  %p1689_p0 = scmp.lt.u32.totalorder %s1681_s13, %s2236_s26 }
 0x356   : > { %p1683_p7 = pnand %p1682_p11, %p1967_p10 }
 0x357   : > { %p1688_p13 = por %p1687_p2, %p1686_p1 }
 0x358   : > { %p1684_p12 = pneg %p1683_p7 }
 0x359   : > { %p1690_p4 = por %p1689_p0, %p1688_p13 }
 0x35b   : > { %p1691_p6 = pnand %p1690_p4, %p1684_p12 }
 0x35d   : > { %1694 = shalt.err (!%p1691_p6)
}
 0x35e   : > { %s1764_s19 = smov 128   ;;  %s1765_s27 = smov 8  }
 0x35f   : > { %1397 = dma.vmem_to_hbm [thread:$0]  (%p1967_p10), %s2238_s12, 2432, %s2236_s26, %s1042_s25, %s1764_s19, %s1764_s19, %s1765_s27  }
 0x360 PF: > { %s1070_s8 = sand.u32 1, %s1737_s21   ;;  %p2318_p3 = scmp.ne.s32.totalorder %s2299_s28, 0 }
 0x361   : > { %p2319_p5 = scmp.ge.s32.totalorder %s1749_s24, 2  ;;  %s1071_s2 = scalar_lea.sflag [#allocation4], %s1070_s8 }
 0x363   : > { %p1420_p9 = pnand %p2319_p5, %p2318_p3 }
 0x365   : > { %1732 = dma.done.wait (!%p1420_p9), %s1071_s2, 2432  }
 0x366   : > { %1734 = vsyncadd (!%p1420_p9), %s1071_s2, 4294964864  ;;  %p24_p8 = scmp.ge.s32.totalorder %s1957_s18, 4   ;;  %s2320_s21 = smov %s1741_s22 }
 0x367   : > { %s2321_s22 = smov %s1745_s23  ;;  %s2322_s23 = smov %s1973_s16 }
 0x368   : > { %s2323_s24 = smov %s1957_s18  ;;  %26 = sbr.rel (!%p24_p8) target bundleno = 13 (0xd), region = 118 }
 0x36f   :  { %1076 = vsyncpa [#allocation3], 1 }
 0x370   :  { %1078 = vsyncpa [#allocation3 + $0x1], 1 }
 0x371   :  { %1079 = vsyncpa [#allocation6], 1 }
 0x372   :  { %1081 = vsyncpa [#allocation6 + $0x1], 1 }
 0x373   :  { %1082 = vsyncpa [#allocation9], 1 }
 0x374   :  { %1083 = vsyncpa [#allocation12], 1 }
 0x375   :  { %1084 = vsyncpa [#allocation4], 1 }
 0x376   :  { %1086 = vsyncpa [#allocation4 + $0x1], 1 }

</bundles_post_ra>
